<compile_context>
chip_gen: v7x
topology: tpu7x:2x2x1
jax: 0.10.0
libtpu: 0.0.40
codegen_flags: <defaults>
</compile_context>

<pallas_src>
import jax
import jax.numpy as jnp
from jax.experimental import pallas as pl
from jax.experimental.pallas import tpu as pltpu


def _round_up(a, b):
    return (a + b - 1) // b * b


def _largest_tile_mult128(dim_padded, cap):
    """Largest multiple of 128 that divides `dim_padded` (itself a multiple of 128) and is <= cap."""
    q = dim_padded // 128
    m_cap = max(1, cap // 128)
    for m in range(min(m_cap, q), 0, -1):
        if q % m == 0:
            return m * 128
    return 128


def _vmem_ceiling():
    """Generation-aware VMEM budget ceiling."""
    cap = None
    try:
        cap = getattr(pltpu.get_tpu_info(), "vmem_capacity_bytes", None)
    except Exception:
        cap = None
    if cap is None:
        cap = 128 << 20
    if cap <= (64 << 20):      # v7x: 64 MiB physical -> leave headroom for Mosaic scratch
        return 48 << 20
    return 100 << 20           # v5e / v6e: 128 MiB physical


def _patch_kernel_f32out(x_ref, w_ref, gb_ref, o_ref):
    """f32 output: accumulate directly into the resident output block (no scratch)."""
    k = pl.program_id(2)

    @pl.when(k == 0)
    def _():
        o_ref[...] = jnp.zeros_like(o_ref)

    o_ref[...] += jnp.dot(x_ref[...], w_ref[...], preferred_element_type=jnp.float32)

    @pl.when(k == pl.num_programs(2) - 1)
    def _():
        # Epilogue: out = acc * clip(c,0,1) + bias*clip(c,0,1)
        o_ref[...] = o_ref[...] * gb_ref[0:1, :] + gb_ref[1:2, :]


def _patch_kernel_acc(x_ref, w_ref, gb_ref, o_ref, acc_ref):
    """Non-f32 output: keep an f32 accumulator scratch and cast once in the epilogue."""
    k = pl.program_id(2)

    @pl.when(k == 0)
    def _():
        acc_ref[...] = jnp.zeros_like(acc_ref)

    acc_ref[...] += jnp.dot(x_ref[...], w_ref[...], preferred_element_type=jnp.float32)

    @pl.when(k == pl.num_programs(2) - 1)
    def _():
        o_ref[...] = (acc_ref[...] * gb_ref[0:1, :] + gb_ref[1:2, :]).astype(o_ref.dtype)


def patch_forward(x, weight_t, bias, slim_coef, *, tm=512, tn=512, tk=1024,
                  compute_dtype=jnp.bfloat16):
    """x: [B, S, H]; weight_t: [H, I] (pre-transposed nn.Linear weight); bias: [I];
    slim_coef: [I] -> returns [B, S, I] with the original dtype of x."""
    B, S, H = x.shape
    I = weight_t.shape[1]
    M = B * S
    out_dtype = x.dtype

    if compute_dtype is not None:
        if x.dtype != compute_dtype:
            x = x.astype(compute_dtype)
        if weight_t.dtype != compute_dtype:
            weight_t = weight_t.astype(compute_dtype)
    in_dtype = x.dtype
    align_m = 16 if jnp.dtype(in_dtype).itemsize == 2 else 8   # bf16 packs 2 rows / sublane

    # ---- tile sizing: pad only to the unavoidable sublane / 128-lane minimum ----
    tm_eff = min(_round_up(tm, align_m), _round_up(M, align_m))
    Mp = _round_up(M, tm_eff)

    Ip = _round_up(I, 128)
    tn_eff = _largest_tile_mult128(Ip, tn)

    if H <= tk:
        tk_eff, Hp = H, H                      # single K step, full-dim block is layout-legal
    else:
        Hp = _round_up(H, 128)
        tk_eff = _largest_tile_mult128(Hp, tk)

    # v7x has 2 TensorCores: keep at least one "parallel" axis with >= 2 blocks.
    if Mp // tm_eff == 1 and Ip // tn_eff == 1 and Ip >= 256:
        tn_eff = _largest_tile_mult128(Ip, max(128, Ip // 2))

    # ---- pad inputs only where the tiling requires it ----
    x2 = x.reshape(M, H)
    if (Mp, Hp) != (M, H):
        x2 = jnp.pad(x2, ((0, Mp - M), (0, Hp - H)))
    w2 = weight_t
    if (Hp, Ip) != (H, I):
        # At most 127 extra rows/cols (128-alignment); no padding at all for aligned FF sizes.
        w2 = jnp.pad(w2, ((0, Hp - H), (0, Ip - I)))

    # Hoist the loop-invariant gate math and merge bias+gate into ONE side operand:
    #   out = (x @ W + b) * g  =  (x @ W) * g + (b * g),   g = clip(slim_coef, 0, 1)
    gate = jnp.clip(slim_coef.astype(jnp.float32), 0.0, 1.0)
    gb = jnp.stack([gate, bias.astype(jnp.float32) * gate], axis=0)     # (2, I) f32
    if Ip != I:
        gb = jnp.pad(gb, ((0, 0), (0, Ip - I)))

    grid = (Mp // tm_eff, Ip // tn_eff, Hp // tk_eff)
    use_scratch = jnp.dtype(out_dtype) != jnp.dtype(jnp.float32)

    # ---- VMEM budget: double-buffered tiles (+ f32 acc only when needed), generation-aware cap ----
    in_item = jnp.dtype(in_dtype).itemsize
    out_item = jnp.dtype(out_dtype).itemsize
    vmem_bytes = (2 * (tm_eff * tk_eff + tk_eff * tn_eff) * in_item   # x / w double-buffered
                  + 2 * tm_eff * tn_eff * out_item                    # output double-buffered
                  + (tm_eff * tn_eff * 4 if use_scratch else 0)       # accumulator scratch
                  + 2 * 2 * tn_eff * 4)                               # merged (gate, bias*gate)
    vmem_limit = int(min(max(vmem_bytes + (8 << 20), 32 << 20), _vmem_ceiling()))

    cost = pl.CostEstimate(
        flops=2 * M * H * I,
        transcendentals=0,
        bytes_accessed=(M * H + H * I) * in_item + M * I * out_item,
    )

    in_specs = [
        pl.BlockSpec((tm_eff, tk_eff), lambda i, j, k: (i, k)),   # x tile
        pl.BlockSpec((tk_eff, tn_eff), lambda i, j, k: (k, j)),   # weight panel
        pl.BlockSpec((2, tn_eff), lambda i, j, k: (0, j)),        # merged gate / bias*gate slice
    ]
    out_spec = pl.BlockSpec((tm_eff, tn_eff), lambda i, j, k: (i, j))

    kernel = _patch_kernel_acc if use_scratch else _patch_kernel_f32out
    scratch = [pltpu.VMEM((tm_eff, tn_eff), jnp.float32)] if use_scratch else []

    out = pl.pallas_call(
        kernel,
        out_shape=jax.ShapeDtypeStruct((Mp, Ip), out_dtype),
        grid_spec=pltpu.PrefetchScalarGridSpec(
            num_scalar_prefetch=0,
            grid=grid,
            in_specs=in_specs,
            out_specs=out_spec,
            scratch_shapes=scratch,
        ),
        compiler_params=pltpu.CompilerParams(
            dimension_semantics=("parallel", "parallel", "arbitrary"),
            vmem_limit_bytes=vmem_limit,
        ),
        cost_estimate=cost,
    )(x2, w2, gb)

    return out[:M, :I].reshape(B, S, I)


if __name__ == "__main__":
    # Small shapes consistent with the module's forward: [batch, seq, hidden] -> [batch, seq, intermediate]
    B, S, H, I = 2, 8, 32, 128

    key = jax.random.PRNGKey(0)
    kx, kw, kb, kc, k2x, k2w, k2b, k2c, k3x = jax.random.split(key, 9)

    x = jax.random.normal(kx, (B, S, H), dtype=jnp.float32)
    # ff_layer = nn.Linear(H, I): torch weight is [I, H]; store it pre-transposed as [H, I].
    weight_t = (jax.random.normal(kw, (I, H), dtype=jnp.float32) * (1.0 / jnp.sqrt(H))).T
    bias = jax.random.normal(kb, (I,), dtype=jnp.float32) * 0.01
    # Module __init__ uses torch.ones(intermediate_size); use a spread so clip(., 0, 1) is exercised.
    slim_coef = jax.random.uniform(kc, (I,), dtype=jnp.float32, minval=-0.5, maxval=1.5)
    gate = jnp.clip(slim_coef, 0.0, 1.0)

    # 1) Default path: bf16 operands on the MXU, f32 accumulation, f32 output (in-place accumulate).
    out = jax.block_until_ready(patch_forward(x, weight_t, bias, slim_coef))
    xb = x.astype(jnp.bfloat16).astype(jnp.float32)
    wb = weight_t.astype(jnp.bfloat16).astype(jnp.float32)
    ref = (jnp.einsum("bsh,hi->bsi", xb, wb) + bias) * gate
    assert out.shape == (B, S, I)
    assert jnp.allclose(out, ref, atol=1e-3, rtol=1e-3), "mismatch vs reference (bf16 compute)"

    # 2) Ragged sizes exercising the minimal-padding path with full f32 compute (tight tolerance).
    B2, S2, H2, I2 = 3, 70, 96, 200
    x2 = jax.random.normal(k2x, (B2, S2, H2), dtype=jnp.float32)
    w2 = jax.random.normal(k2w, (H2, I2), dtype=jnp.float32) * (1.0 / jnp.sqrt(H2))
    b2 = jax.random.normal(k2b, (I2,), dtype=jnp.float32) * 0.01
    c2 = jax.random.uniform(k2c, (I2,), dtype=jnp.float32, minval=-0.5, maxval=1.5)
    out2 = jax.block_until_ready(
        patch_forward(x2, w2, b2, c2, tm=128, tn=128, compute_dtype=jnp.float32))
    ref2 = (jnp.einsum("bsh,hi->bsi", x2, w2) + b2) * jnp.clip(c2, 0.0, 1.0)
    assert out2.shape == (B2, S2, I2)
    assert jnp.allclose(out2, ref2, atol=1e-4, rtol=1e-4), "mismatch vs reference (padded f32 case)"

    # 3) bf16 activations in -> bf16 out (exercises the f32-scratch epilogue path).
    x3 = jax.random.normal(k3x, (B, S, H), dtype=jnp.float32).astype(jnp.bfloat16)
    out3 = jax.block_until_ready(patch_forward(x3, weight_t, bias, slim_coef))
    ref3 = (jnp.einsum("bsh,hi->bsi", x3.astype(jnp.float32), wb) + bias) * gate
    assert out3.dtype == jnp.bfloat16
    assert jnp.allclose(out3.astype(jnp.float32), ref3, atol=3e-2, rtol=3e-2), \
        "mismatch vs reference (bf16 output case)"

    print("KERNEL_OK")
</pallas_src>

<mosaic_0001>
module attributes {stable_mosaic.version = 11 : i64} {
  func.func @_patch_kernel_f32out(%arg0: i32, %arg1: i32, %arg2: i32, %arg3: memref<16x32xbf16, #tpu.memory_space<vmem>>, %arg4: memref<32x128xbf16, #tpu.memory_space<vmem>>, %arg5: memref<2x128xf32, #tpu.memory_space<vmem>>, %arg6: memref<16x128xf32, #tpu.memory_space<vmem>>) attributes {dimension_semantics = [#tpu.dimension_semantics<parallel>, #tpu.dimension_semantics<parallel>, #tpu.dimension_semantics<arbitrary>], iteration_bounds = array<i64: 1, 1, 1>, scalar_prefetch = 0 : i64, scratch_operands = 0 : i64, tpu.core_type = #tpu.core_type<tc>, window_params = [{transform_indices = @transform_0, window_bounds = array<i64: 16, 32>}, {transform_indices = @transform_1, window_bounds = array<i64: 32, 128>}, {transform_indices = @transform_2, window_bounds = array<i64: 2, 128>}, {transform_indices = @transform_3, window_bounds = array<i64: 16, 128>}]} {
    %c0_i32 = arith.constant 0 : i32
    %0 = arith.cmpi eq, %arg2, %c0_i32 : i32
    %1 = arith.extui %0 : i1 to i32
    %c0_i32_0 = arith.constant 0 : i32
    %2 = arith.cmpi ne, %1, %c0_i32_0 : i32
    scf.if %2 {
      %cst_10 = arith.constant 0.000000e+00 : f32
      %12 = vector.broadcast %cst_10 : f32 to vector<16x128xf32>
      %c0_11 = arith.constant 0 : index
      %c0_12 = arith.constant 0 : index
      %13 = vector.load %arg6[%c0_11, %c0_12] : memref<16x128xf32, #tpu.memory_space<vmem>>, vector<16x128xf32>
      tpu.vector_store %arg6[%c0_11, %c0_12], %12 {strides = array<i32>} : memref<16x128xf32, #tpu.memory_space<vmem>>, vector<16x128xf32>,
    } else {
    }
    %c0 = arith.constant 0 : index
    %c0_1 = arith.constant 0 : index
    %3 = vector.load %arg6[%c0, %c0_1] : memref<16x128xf32, #tpu.memory_space<vmem>>, vector<16x128xf32>
    %c0_2 = arith.constant 0 : index
    %c0_3 = arith.constant 0 : index
    %4 = vector.load %arg3[%c0_2, %c0_3] : memref<16x32xbf16, #tpu.memory_space<vmem>>, vector<16x32xbf16>
    %c0_4 = arith.constant 0 : index
    %c0_5 = arith.constant 0 : index
    %5 = vector.load %arg4[%c0_4, %c0_5] : memref<32x128xbf16, #tpu.memory_space<vmem>>, vector<32x128xbf16>
    %cst = arith.constant dense<0.000000e+00> : vector<16x128xf32>
    %6 = tpu.matmul %4, %5, %cst {dimension_numbers = #tpu.dot_dimension_numbers<[1], [0], [0], [1], [0, 0, 1, 1], [], []>} : vector<16x32xbf16>, vector<32x128xbf16>, vector<16x128xf32> -> vector<16x128xf32>
    %7 = arith.addf %3, %6 : vector<16x128xf32>
    %c0_6 = arith.constant 0 : index
    %c0_7 = arith.constant 0 : index
    %8 = vector.load %arg6[%c0_6, %c0_7] : memref<16x128xf32, #tpu.memory_space<vmem>>, vector<16x128xf32>
    tpu.vector_store %arg6[%c0_6, %c0_7], %7 {strides = array<i32>} : memref<16x128xf32, #tpu.memory_space<vmem>>, vector<16x128xf32>,
    %c0_i32_8 = arith.constant 0 : i32
    %9 = arith.cmpi eq, %arg2, %c0_i32_8 : i32
    %10 = arith.extui %9 : i1 to i32
    %c0_i32_9 = arith.constant 0 : i32
    %11 = arith.cmpi ne, %10, %c0_i32_9 : i32
    scf.if %11 {
      %c0_10 = arith.constant 0 : index
      %c0_11 = arith.constant 0 : index
      %12 = vector.load %arg6[%c0_10, %c0_11] : memref<16x128xf32, #tpu.memory_space<vmem>>, vector<16x128xf32>
      %c0_12 = arith.constant 0 : index
      %c0_13 = arith.constant 0 : index
      %13 = vector.load %arg5[%c0_12, %c0_13] : memref<2x128xf32, #tpu.memory_space<vmem>>, vector<1x128xf32>
      %14 = vector.broadcast %13 : vector<1x128xf32> to vector<16x128xf32>
      %15 = arith.mulf %12, %14 : vector<16x128xf32>
      %c1 = arith.constant 1 : index
      %c0_14 = arith.constant 0 : index
      %16 = vector.load %arg5[%c1, %c0_14] : memref<2x128xf32, #tpu.memory_space<vmem>>, vector<1x128xf32>
      %17 = vector.broadcast %16 : vector<1x128xf32> to vector<16x128xf32>
      %18 = arith.addf %15, %17 : vector<16x128xf32>
      %c0_15 = arith.constant 0 : index
      %c0_16 = arith.constant 0 : index
      %19 = vector.load %arg6[%c0_15, %c0_16] : memref<16x128xf32, #tpu.memory_space<vmem>>, vector<16x128xf32>
      tpu.vector_store %arg6[%c0_15, %c0_16], %18 {strides = array<i32>} : memref<16x128xf32, #tpu.memory_space<vmem>>, vector<16x128xf32>,
    } else {
    }
    return
  }
  func.func @transform_0(%arg0: i32, %arg1: i32, %arg2: i32) -> (i32, i32) {
    %c0_i32 = arith.constant 0 : i32
    return %arg0, %arg2 : i32, i32
  }
  func.func @transform_1(%arg0: i32, %arg1: i32, %arg2: i32) -> (i32, i32) {
    %c0_i32 = arith.constant 0 : i32
    return %arg2, %arg1 : i32, i32
  }
  func.func @transform_2(%arg0: i32, %arg1: i32, %arg2: i32) -> (i32, i32) {
    %c0_i32 = arith.constant 0 : i32
    %c0_i32_0 = arith.constant 0 : i32
    return %c0_i32, %arg1 : i32, i32
  }
  func.func @transform_3(%arg0: i32, %arg1: i32, %arg2: i32) -> (i32, i32) {
    %c0_i32 = arith.constant 0 : i32
    return %arg0, %arg1 : i32, i32
  }
}

</mosaic_0001>

<bundles_post_ra>
// kernel: tpu_custom_call.1
= control target key start
LH: loop header
LB: loop body
LE: loop exit
PB: predicated region body
PF: predicated region fallthrough
CT: control target
= control target key end

     0   :  { %8 = vsyncpa [#allocation3], 0  ;;  %s335_s0 = inlined_call_operand.hbm [shape: bf16[16,32], index: 0, kind: input, shape index: {}]   ;;  %s336_s1 = inlined_call_operand.hbm [shape: bf16[32,128], index: 1, kind: input, shape index: {}]   ;;  %s337_s2 = inlined_call_operand.vmem [shape: f32[2,128], index: 2, kind: input, shape index: {}]   ;;  %s338_s3 = inlined_call_operand.hbm [shape: f32[16,128], index: 3, kind: output, shape index: {}]  }
   0x1   :  { %9 = vsyncpa [#allocation6], 0 }
   0x2   :  { %10 = vsyncpa [#allocation4], 0  ;;  %s264_s12 = smov [#allocation2]   ;;  %s192_s16 = scalar_lea.hbm %s335_s0, 128 }
   0x3   :  { %s16_s13 = sshll.u32 %s264_s12, 4  ;;  %p193_p0 = scmp.ne.s32.totalorder %s335_s0, %s192_s16  ;;  %s17_s13 = int_to_ptr.vmem [resolvable:$true] %s16_s13 }
   0x4   :  { %p196_p1 = scmp.lt.u32.totalorder %s192_s16, %s335_s0 }
   0x6   :  { %p198_p2 = pnand %p196_p1, %p193_p0 }
   0x8   :  { %201 = shalt.err (!%p198_p2)
}
   0x9   :  { %s202_s21 = scalar_lea.vmem %s17_s13, 128  ;;  %p207_p4 = scmp.lt.s32.totalorder %s17_s13, %s17_s13 }
   0xa   :  { %p203_p3 = scmp.ne.s32.totalorder %s17_s13, %s202_s21  ;;  %p208_p5 = scmp.lt.s32.totalorder %s202_s21, %s202_s21 }
   0xc   :  { %p209_p6 = por %p208_p5, %p207_p4 }
   0xe   :  { %p210_p7 = pnand %p209_p6, %p203_p3 }
  0x10   :  { %213 = shalt.err (!%p210_p7)
}
  0x11   :  { %s265_s22 = smov 64   ;;  %s266_s23 = smov 4  }
  0x12   :  { %22 = dma.hbm_to_vmem [thread:$0]  %s335_s0, 128, %s17_s13, [#allocation3], %s265_s22, %s265_s22, %s266_s23  }
  0x13   :  { %s267_s26 = smov [#allocation5]   ;;  %s214_s30 = scalar_lea.hbm %s336_s1, 256 }
  0x14   :  { %s28_s27 = sshll.u32 %s267_s26, 4  ;;  %p215_p8 = scmp.ne.s32.totalorder %s336_s1, %s214_s30  ;;  %s29_s27 = int_to_ptr.vmem [resolvable:$true] %s28_s27 }
  0x15   :  { %p218_p9 = scmp.lt.u32.totalorder %s214_s30, %s336_s1 }
  0x17   :  { %p220_p10 = pnand %p218_p9, %p215_p8 }
  0x19   :  { %223 = shalt.err (!%p220_p10)
}
  0x1a   :  { %s224_s8 = scalar_lea.vmem %s29_s27, 256  ;;  %p229_p12 = scmp.lt.s32.totalorder %s29_s27, %s29_s27 }
  0x1b   :  { %p225_p11 = scmp.ne.s32.totalorder %s29_s27, %s224_s8  ;;  %p230_p13 = scmp.lt.s32.totalorder %s224_s8, %s224_s8 }
  0x1d   :  { %p231_p0 = por %p230_p13, %p229_p12 }
  0x1f   :  { %p232_p1 = pnand %p231_p0, %p225_p11 }
  0x21   :  { %235 = shalt.err (!%p232_p1)
}
  0x22   :  { %34 = dma.hbm_to_vmem [thread:$0]  %s336_s1, 256, %s29_s27, [#allocation6], %s265_s22, %s265_s22, %s266_s23  }
  0x23   :  { %258 = dma.done.wait [#allocation3], 128  }
  0x24   :  { %259 = vsyncadd [#allocation3], 4294967168 }
  0x25   :  { %260 = dma.done.wait [#allocation6], 256  }
  0x26   :  { %261 = vsyncadd [#allocation6], 4294967040  ;;  %v268_v0 = vmov 0.0   ;;  %vm269_vm0 = vmmov 0   ;;  %v189_v1 = vld [vmem:[#allocation5] sm:$0xff]   ;;  %v190_v2 = vld [vmem:[#allocation5 + $0x8] sm:$0xff]  }
  0x27   :  { %172 = vmatprep.subr.bf16.mxu0 %v268_v0  ;;  %176 = vmatprep.mubr.msk.bf16.mxu0 %vm269_vm0, %v268_v0  ;;  %v191_v3 = vld [vmem:[#allocation2] sm:$0xff]   ;;  %vm75_vm1 = vcmask 261120   ;;  %s270_s13 = smov [#allocation7]  }
  0x28   :  { %173 = vmatpush3.bf16.msra.mxu0 %v189_v1  ;;  %v167_v5 = vld [vmem:[%s337_s2] ss:$0 sm:$0xff]  ;;  %v168_v8 = vld [vmem:[%s337_s2 + $0x1] ss:$0 sm:$0xff]  ;;  %s150_s14 = sshll.u32 %s270_s13, 4  ;;  %s151_s14 = int_to_ptr.vmem [resolvable:$true] %s150_s14 }
  0x29   :  { %174 = vmatprep.subr.bf16.mxu0 %v268_v0  ;;  %s236_s15 = scalar_lea.vmem %s151_s14, 256  ;;  %p241_p3 = scmp.lt.s32.totalorder %s151_s14, %s151_s14 }
  0x2a   :  { %p237_p2 = scmp.ne.s32.totalorder %s151_s14, %s236_s15  ;;  %p242_p4 = scmp.lt.s32.totalorder %s236_s15, %s236_s15 }
  0x2c   :  { %175 = vmatpush3.bf16.msra.mxu0 %v190_v2  ;;  %p243_p5 = por %p242_p4, %p241_p3 }
  0x2e   :  { %p244_p6 = pnand %p243_p5, %p237_p2 }
  0x2f   :  { %177 = vmatmul.mubr.msk.bf16.vlgmr.msra.gmra.mrb[0].mxu0 %vm75_vm1, %v191_v3 }
 0x102   :  { %v113_v4 = vpop.f32.mrb[0].mxu0 }
 0x103   :  { %v178_v6 = vpop.f32.mrb[1].mxu0  ;;  %v134_v10 = vmul.f32 %v167_v5, %v113_v4 }
 0x104   :  { %v116_v7 = vpop.f32.mrb[2].mxu0 }
 0x105   :  { %v179_v9 = vpop.f32.mrb[3].mxu0  ;;  %v135_v11 = vmul.f32 %v167_v5, %v116_v7  ;;  %v141_v12 = vadd.f32 %v168_v8, %v134_v10 }
 0x107   :  { %v142_v13 = vadd.f32 %v168_v8, %v135_v11  ;;  %143 = vst [vmem:[#allocation7] sm:$0xff] %v141_v12 }
 0x109   :  { %144 = vst [vmem:[#allocation7 + $0x8] sm:$0xff] %v142_v13 }
 0x10a   :  { %247 = shalt.err (!%p244_p6)
}
 0x10b   :  { %s248_s2 = scalar_lea.hbm %s338_s3, 256 }
 0x10c   :  { %p249_p7 = scmp.ne.s32.totalorder %s338_s3, %s248_s2  ;;  %p252_p8 = scmp.lt.u32.totalorder %s248_s2, %s338_s3 }
 0x10e   :  { %p254_p9 = pnand %p252_p8, %p249_p7 }
 0x110   :  { %257 = shalt.err (!%p254_p9)
}
 0x111   :  { %s271_s22 = smov 128   ;;  %s272_s23 = smov 8  }
 0x112   :  { %156 = dma.vmem_to_hbm [thread:$0]  %s151_s14, 256, %s338_s3, [#allocation4], %s271_s22, %s271_s22, %s272_s23  }
 0x113   :  { %262 = dma.done.wait [#allocation4], 256  }
 0x114   :  { %263 = vsyncadd [#allocation4], 4294967040 }
 0x115   :  { %160 = vsyncpa [#allocation3], 1 }
 0x116   :  { %161 = vsyncpa [#allocation6], 1 }
 0x117   :  { %162 = vsyncpa [#allocation4], 1 }

</bundles_post_ra>
